<compile_context>
chip_gen: v6e
topology: v6e:2x2x1
jax: 0.10.0
libtpu: 0.0.40
codegen_flags: <defaults>
</compile_context>

<pallas_src>
import jax
import jax.numpy as jnp
from jax.experimental import pallas as pl
from jax.experimental.pallas import tpu as pltpu

_LANES = 128  # TPU vreg lane width


def _sublanes_for(dtype) -> int:
    """Packed sublane granularity: 8 for 4-byte, 16 for 2-byte, 32 for 1-byte."""
    itemsize = jnp.dtype(dtype).itemsize
    return max(8, 32 // max(1, itemsize))


# ---------------------------------------------------------------------------
# Hot path: forward() is an identity -> no kernel at all.
# ---------------------------------------------------------------------------
def vector_var_forward(A: jax.Array) -> jax.Array:
    """vector_var.forward() -> A.  Identity: return the parameter directly."""
    return A


# ---------------------------------------------------------------------------
# Optional materializing copy, kept as a lane-dense Pallas kernel.
# ---------------------------------------------------------------------------
def _copy_kernel(x_ref, o_ref):
    o_ref[...] = x_ref[...]


def vector_var_materialize(
    A: jax.Array,
    *,
    target_block_bytes: int = 2 << 20,   # ~2 MiB blocks: near roofline on all gens
    small_bytes: int = 1 << 20,          # below this, skip the kernel entirely
    force_kernel: bool = False,
) -> jax.Array:
    """Explicit Pallas copy of A (only if a fresh buffer is truly needed)."""
    orig_shape = A.shape
    dtype = A.dtype
    itemsize = jnp.dtype(dtype).itemsize
    n = A.size
    nbytes = n * itemsize

    # Small-tensor fast path: pallas_call launch + ~0.35 us/step overhead would
    # dominate.  JAX arrays are immutable, so the identity is a valid result.
    if (not force_kernel) and nbytes <= small_bytes:
        return A

    sublanes = _sublanes_for(dtype)

    # Lane-dense 2-D slab: rows x 128.  Pad ONLY when n is not a lane
    # multiple, and then only up to the 128-lane boundary (never to a
    # block_rows multiple) — Pallas handles the ragged last row-block itself.
    rows = pl.cdiv(n, _LANES)
    pad = rows * _LANES - n
    flat = jnp.ravel(A)
    if pad:
        flat = jnp.pad(flat, (0, pad))
    slab = flat.reshape(rows, _LANES)

    # Block rows: ~target_block_bytes per block, rounded to the packed sublane
    # count for this dtype.
    block_rows = max(sublanes, target_block_bytes // (_LANES * itemsize))
    block_rows = (block_rows // sublanes) * sublanes
    # v7x has 2 TensorCores: keep the parallel grid >= 2 blocks whenever the
    # slab is bigger than one block (harmless on single-TC v5e/v6e).
    if rows > block_rows:
        half = pl.cdiv(pl.cdiv(rows, 2), sublanes) * sublanes
        block_rows = min(block_rows, half)
    # Never use a block taller than the (sublane-rounded) slab itself.
    block_rows = min(block_rows, pl.cdiv(rows, sublanes) * sublanes)

    grid = pl.cdiv(rows, block_rows)  # ragged last block is masked by Pallas

    out_slab = pl.pallas_call(
        _copy_kernel,
        out_shape=jax.ShapeDtypeStruct((rows, _LANES), dtype),
        grid=(grid,),
        in_specs=[pl.BlockSpec((block_rows, _LANES), lambda i: (i, 0))],
        out_specs=pl.BlockSpec((block_rows, _LANES), lambda i: (i, 0)),
        compiler_params=pltpu.CompilerParams(
            dimension_semantics=("parallel",),
        ),
        cost_estimate=pl.CostEstimate(
            flops=0,
            transcendentals=0,
            bytes_accessed=2 * rows * _LANES * itemsize,
        ),
    )(slab)

    if pad:
        return out_slab.reshape(-1)[:n].reshape(orig_shape)
    return out_slab.reshape(orig_shape)


def init_vector_var_params(key, size: int, set_size: int) -> jax.Array:
    """Deterministic stand-in for torch.rand(set_size, size, size)."""
    return jax.random.uniform(key, (set_size, size, size), dtype=jnp.float32)


if __name__ == "__main__":
    # Small shapes consistent with the module: set_size=1, image_size=16.
    set_size = 1
    size = 16

    key = jax.random.PRNGKey(0)
    A = init_vector_var_params(key, size, set_size)

    # Hot path: forward() is the parameter itself (zero-cost identity).
    fwd = jax.block_until_ready(vector_var_forward(A))
    assert fwd.shape == (set_size, size, size)
    assert fwd.dtype == A.dtype
    assert bool(jnp.array_equal(fwd, A))

    # Default materialize on the tiny module tensor: small-size gate bypasses
    # the kernel (pure identity, no launch overhead).
    out_small = jax.block_until_ready(vector_var_materialize(A))
    assert bool(jnp.array_equal(out_small, A))

    # Exercise the Pallas copy kernel on the module shape (n % 128 == 0, so
    # no padding; single ragged row-block, masked writes).
    out_k = jax.block_until_ready(vector_var_materialize(A, force_kernel=True))
    assert out_k.shape == A.shape and out_k.dtype == A.dtype
    assert bool(jnp.array_equal(out_k, A))

    # Exercise the pad path (n not a multiple of 128) through the kernel.
    B = jax.random.uniform(jax.random.PRNGKey(1), (3, 40, 52), dtype=jnp.float32)
    out_pad = jax.block_until_ready(vector_var_materialize(B, force_kernel=True))
    assert out_pad.shape == B.shape and out_pad.dtype == B.dtype
    assert bool(jnp.array_equal(out_pad, B))

    # Exercise a multi-block run with bf16 (dtype-aware 16-row sublane
    # rounding, grid > 1 parallel blocks), still small (~768 KiB).
    C = jax.random.uniform(
        jax.random.PRNGKey(2), (6, 256, 256), dtype=jnp.float32
    ).astype(jnp.bfloat16)
    out_big = jax.block_until_ready(
        vector_var_materialize(C, force_kernel=True, target_block_bytes=256 * 1024)
    )
    assert out_big.shape == C.shape and out_big.dtype == C.dtype
    assert bool(jnp.array_equal(out_big, C))

    print("KERNEL_OK")
</pallas_src>

<mosaic_0001>
module attributes {stable_mosaic.version = 11 : i64} {
  func.func @_copy_kernel(%arg0: i32, %arg1: memref<8x128xf32, #tpu.memory_space<vmem>>, %arg2: memref<8x128xf32, #tpu.memory_space<vmem>>) attributes {dimension_semantics = [#tpu.dimension_semantics<parallel>], iteration_bounds = array<i64: 1>, scalar_prefetch = 0 : i64, scratch_operands = 0 : i64, tpu.core_type = #tpu.core_type<tc>, window_params = [{transform_indices = @transform_0, window_bounds = array<i64: 8, 128>}, {transform_indices = @transform_1, window_bounds = array<i64: 8, 128>}]} {
    %c0 = arith.constant 0 : index
    %c0_0 = arith.constant 0 : index
    %0 = vector.load %arg1[%c0, %c0_0] : memref<8x128xf32, #tpu.memory_space<vmem>>, vector<8x128xf32>
    %c0_1 = arith.constant 0 : index
    %c0_2 = arith.constant 0 : index
    %1 = vector.load %arg2[%c0_1, %c0_2] : memref<8x128xf32, #tpu.memory_space<vmem>>, vector<8x128xf32>
    tpu.vector_store %arg2[%c0_1, %c0_2], %0 {strides = array<i32>} : memref<8x128xf32, #tpu.memory_space<vmem>>, vector<8x128xf32>,
    return
  }
  func.func @transform_0(%arg0: i32) -> (i32, i32) {
    %c0_i32 = arith.constant 0 : i32
    %c0_i32_0 = arith.constant 0 : i32
    return %arg0, %c0_i32 : i32, i32
  }
  func.func @transform_1(%arg0: i32) -> (i32, i32) {
    %c0_i32 = arith.constant 0 : i32
    %c0_i32_0 = arith.constant 0 : i32
    return %arg0, %c0_i32 : i32, i32
  }
}

</mosaic_0001>

<bundles_post_ra>
// kernel: tpu_custom_call.1
= control target key start
LH: loop header
LB: loop body
LE: loop exit
PB: predicated region body
PF: predicated region fallthrough
CT: control target
= control target key end

     0   :  { %6 = vsyncpa [#allocation3], 0  ;;  %s110_s0 = inlined_call_operand.hbm [shape: f32[2,128], index: 0, kind: input, shape index: {}]   ;;  %s111_s1 = inlined_call_operand.hbm [shape: f32[2,128], index: 1, kind: output, shape index: {}]  }
   0x1   :  { %7 = vsyncpa [#allocation4], 0 }
   0x2   :  { %12 = vsyncadd [#allocation3], 96  ;;  %s90_s6 = smov [#allocation2]  }
   0x3   :  { %s13_s7 = sshll.u32 %s90_s6, 4  ;;  %s14_s7 = int_to_ptr.vmem [resolvable:$true] %s13_s7 }
   0x4   :  { %s54_s8 = scalar_lea.vmem %s14_s7, 32  ;;  %s58_s9 = scalar_lea.vmem %s14_s7, 128 }
   0x5   :  { %p55_p0 = scmp.ne.s32.totalorder %s14_s7, %s54_s8  ;;  %p59_p1 = scmp.lt.s32.totalorder %s14_s7, %s14_s7 }
   0x6   :  { %p60_p2 = scmp.lt.s32.totalorder %s58_s9, %s54_s8 }
   0x8   :  { %p61_p3 = por %p60_p2, %p59_p1 }
   0xa   :  { %p62_p4 = pnand %p61_p3, %p55_p0 }
   0xc   :  { %65 = shalt.err (!%p62_p4)
}
   0xd   :  { %s91_s10 = smov 32   ;;  %s92_s11 = smov 2  }
   0xe   :  { %19 = dma.hbm_to_vmem [thread:$0]  %s110_s0, 32, %s14_s7, [#allocation3], %s91_s10, %s91_s10, %s92_s11  }
   0xf   :  { %86 = dma.done.wait [#allocation3], 128  }
  0x10   :  { %87 = vsyncadd [#allocation3], 4294967168  ;;  %v23_v0 = vld [vmem:[#allocation2] sm:$0xff] }
  0x11   :  { %24 = vst [vmem:[#allocation5] sm:$0xff] %v23_v0 }
  0x12   :  { %29 = vsyncadd [#allocation4], 96  ;;  %s93_s14 = smov [#allocation5]  }
  0x13   :  { %s30_s15 = sshll.u32 %s93_s14, 4  ;;  %s31_s15 = int_to_ptr.vmem [resolvable:$true] %s30_s15 }
  0x14   :  { %s66_s16 = scalar_lea.vmem %s31_s15, 32  ;;  %s70_s17 = scalar_lea.vmem %s31_s15, 128 }
  0x15   :  { %p67_p5 = scmp.ne.s32.totalorder %s31_s15, %s66_s16  ;;  %p71_p6 = scmp.lt.s32.totalorder %s31_s15, %s31_s15 }
  0x16   :  { %p72_p7 = scmp.lt.s32.totalorder %s70_s17, %s66_s16 }
  0x18   :  { %p73_p8 = por %p72_p7, %p71_p6 }
  0x1a   :  { %p74_p9 = pnand %p73_p8, %p67_p5 }
  0x1c   :  { %77 = shalt.err (!%p74_p9)
}
  0x1d   :  { %36 = dma.vmem_to_hbm [thread:$0]  %s31_s15, 32, %s111_s1, [#allocation4], %s91_s10, %s91_s10, %s92_s11  }
  0x1e   :  { %88 = dma.done.wait [#allocation4], 128  }
  0x1f   :  { %89 = vsyncadd [#allocation4], 4294967168 }
  0x20   :  { %40 = vsyncpa [#allocation3], 1 }
  0x21   :  { %41 = vsyncpa [#allocation4], 1 }

</bundles_post_ra>
